<compile_context>
chip_gen: v7x
topology: tpu7x:2x2x1
jax: 0.10.0
libtpu: 0.0.40
codegen_flags: <defaults>
</compile_context>

<pallas_src>
import functools

import numpy as np
import jax
import jax.numpy as jnp
from jax import lax
from jax.experimental import pallas as pl
from jax.experimental.pallas import tpu as pltpu

# ---- SSIM constants (torchmetrics defaults, data_range = 1.0) --------------
KS = 11                 # gaussian kernel size
SIGMA = 1.5             # gaussian sigma
PAD = (KS - 1) // 2     # = 5 (border crop width)
C1 = (0.01 * 1.0) ** 2
C2 = (0.03 * 1.0) ** 2

# deterministic 1-D gaussian taps (same as torchmetrics _gaussian)
_dist = np.arange((1 - KS) / 2.0, (1 + KS) / 2.0, 1.0, dtype=np.float64)
_g = np.exp(-((_dist / SIGMA) ** 2) / 2.0)
GAUSS = _g / _g.sum()


def _ru(x, m):
    return (x + m - 1) // m * m


def _ssim_tile_kernel(a_h_ref, a_w_ref, p_ref, t_ref, o_ref, cat_ref, *,
                      n_true, mask_tail, unroll):
    """One grid step: TN images -> lane-dense partial SSIM sum."""
    a_h = a_h_ref[...]            # (H_out, H)  band matrix: H-axis valid conv + crop
    a_w = a_w_ref[...]            # (W, W_out)  band matrix: W-axis valid conv + crop
    p = p_ref[...]                # (TN, H, W)
    t = t_ref[...]
    tn, h, w = p.shape
    h_out = a_h.shape[0]
    w_out = a_w.shape[1]
    base = pl.program_id(0) * tn

    # All 5 windowed moments, W-axis (lane) blur fused into ONE MXU matmul:
    #   (5*TN*H, W) @ (W, W_out).   Leading-dim reshapes are layout-preserving.
    m = jnp.concatenate([p, t, p * p, t * t, p * t], axis=0)       # (5*TN, H, W)
    y = jnp.dot(m.reshape(5 * tn * h, w), a_w,
                preferred_element_type=jnp.float32)                # (5*TN*H, W_out)
    y = y.reshape(5, tn, h, w_out)
    # Per image, lay the 5 blurred moments side by side along lanes so the
    # sublane (H) blur of all 5 moments is a single MXU matmul per image.
    cat_ref[...] = jnp.concatenate([y[0], y[1], y[2], y[3], y[4]], axis=-1)

    def body(n, acc):
        z = jnp.dot(a_h, cat_ref[n], preferred_element_type=jnp.float32)  # (H_out, 5*W_out)
        mu_p = z[:, 0 * w_out:1 * w_out]
        mu_t = z[:, 1 * w_out:2 * w_out]
        e_pp = z[:, 2 * w_out:3 * w_out]
        e_tt = z[:, 3 * w_out:4 * w_out]
        e_pt = z[:, 4 * w_out:5 * w_out]

        mu_pp = mu_p * mu_p
        mu_tt = mu_t * mu_t
        mu_pt = mu_p * mu_t
        num = (2.0 * mu_pt + C1) * (2.0 * (e_pt - mu_pt) + C2)
        den = (mu_pp + mu_tt + C1) * ((e_pp - mu_pp) + (e_tt - mu_tt) + C2)
        ssim = num / den                                           # (H_out, W_out)
        if mask_tail:
            # Ragged last tile: images past n_true hold garbage, but it never
            # mixes into valid images (all matmuls are row/image-local).  where
            # (not multiply) so Inf/NaN garbage cannot leak into the sum.
            ssim = jnp.where(base + n < n_true, ssim, 0.0)
        return acc + ssim

    acc0 = jnp.zeros((h_out, w_out), jnp.float32)
    if tn <= 16:
        acc = acc0
        for n in range(tn):          # small static unroll
            acc = body(n, acc)
    else:
        acc = lax.fori_loop(0, tn, body, acc0, unroll=unroll)

    # Lane-dense partial-sum output; wrapper reads lane 0 of each tile row.
    o_ref[...] = jnp.full((1, 1, 128), jnp.sum(acc), jnp.float32)


def ssim_loss(pred, target, *, tn_max=256):
    """pred, target: (B, C, H, W) float in [0, 1]. Returns scalar 1 - SSIM."""
    B, C, H, W = pred.shape
    assert H > 2 * PAD and W > 2 * PAD, "spatial dims must exceed 2*pad=10"
    N = B * C
    H_out, W_out = H - 2 * PAD, W - 2 * PAD

    p = pred.reshape(N, H, W).astype(jnp.float32)
    t = target.reshape(N, H, W).astype(jnp.float32)

    # Gaussian band matrices encoding valid conv + 5-pixel border crop.
    a_h = np.zeros((H_out, H), np.float32)
    a_w = np.zeros((W, W_out), np.float32)
    for k in range(KS):
        g = float(GAUSS[k])
        for o in range(H_out):
            a_h[o, o + k] = g
        for o in range(W_out):
            a_w[o + k, o] = g
    a_h = jnp.asarray(a_h)
    a_w = jnp.asarray(a_w)

    # ---- generation-aware VMEM budget (v5e/v6e: 128 MiB, v7x: 64 MiB) ------
    try:
        phys_vmem = int(pltpu.get_tpu_info().vmem_capacity_bytes)
    except Exception:
        phys_vmem = 64 * 1024 * 1024          # conservative across generations
    vmem_limit = max(32 * 1024 * 1024, min(int(phys_vmem * 0.92), 127 * 1024 * 1024))
    budget = int(phys_vmem * 0.70)

    # Per-image VMEM footprint with (8,128) f32 layout padding:
    #   p,t blocks (x2 pipeline buffers) + 5 moment slabs     -> 9x (H,W)
    #   5 W-blurred slabs                                      -> 5x (H,W_out)
    #   lane-concatenated slab for the per-image H-blur matmul -> 1x (H,5*W_out)
    bytes_hw = 4 * _ru(H, 8) * _ru(W, 128)
    bytes_hwo = 4 * _ru(H, 8) * _ru(W_out, 128)
    bytes_hcat = 4 * _ru(H, 8) * _ru(5 * W_out, 128)
    per_image = bytes_hw * 9 + bytes_hwo * 5 + bytes_hcat
    fixed = (2 * 4 * _ru(H_out, 8) * _ru(H, 128)          # a_h (double buffered)
             + 2 * 4 * _ru(W, 8) * _ru(W_out, 128)        # a_w (double buffered)
             + 12 * 4 * _ru(H_out, 8) * _ru(W_out, 128)   # SSIM map temporaries + acc
             + 2 * 4 * _ru(H_out, 8) * _ru(5 * W_out, 128)  # z temporaries
             + 2 * 1024 * 1024)                            # Mosaic internal scratch slack

    tn_fit = int(max(1, min(tn_max, (budget - fixed) // max(per_image, 1))))
    if N >= 2:
        tn_fit = min(tn_fit, max(1, N // 2))   # keep >= 2 grid steps (v7x: 2 TCs)
    tn_fit = max(1, min(tn_fit, N))
    num_tiles = -(-N // tn_fit)
    tn = -(-N // num_tiles)                    # minimizes ragged tail, no HBM pad pass
    mask_tail = (num_tiles * tn != N)

    kernel = functools.partial(_ssim_tile_kernel, n_true=N,
                               mask_tail=mask_tail, unroll=8)
    out = pl.pallas_call(
        kernel,
        out_shape=jax.ShapeDtypeStruct((num_tiles, 1, 128), jnp.float32),
        grid=(num_tiles,),
        in_specs=[
            pl.BlockSpec((H_out, H), lambda i: (0, 0)),       # A_h (broadcast)
            pl.BlockSpec((W, W_out), lambda i: (0, 0)),       # A_w (broadcast)
            pl.BlockSpec((tn, H, W), lambda i: (i, 0, 0)),    # pred tile
            pl.BlockSpec((tn, H, W), lambda i: (i, 0, 0)),    # target tile
        ],
        out_specs=pl.BlockSpec((1, 1, 128), lambda i: (i, 0, 0)),
        scratch_shapes=[pltpu.VMEM((tn, H, 5 * W_out), jnp.float32)],
        compiler_params=pltpu.CompilerParams(
            dimension_semantics=("parallel",),
            vmem_limit_bytes=vmem_limit),
    )(a_h, a_w, p, t)

    total = jnp.sum(out[:, 0, 0])
    return 1.0 - total / (N * H_out * W_out)


def _ssim_loss_ref_np(pred, target):
    """Slow, independent float64 sliding-window reference (torchmetrics semantics)."""
    p = np.asarray(pred, np.float64)
    t = np.asarray(target, np.float64)
    B, C, H, W = p.shape
    p = p.reshape(B * C, H, W)
    t = t.reshape(B * C, H, W)
    win = np.outer(GAUSS, GAUSS)
    Ho, Wo = H - 2 * PAD, W - 2 * PAD
    vals = []
    for n in range(p.shape[0]):
        for i in range(Ho):
            for j in range(Wo):
                wp = p[n, i:i + KS, j:j + KS]
                wt = t[n, i:i + KS, j:j + KS]
                mp = (win * wp).sum()
                mt = (win * wt).sum()
                epp = (win * wp * wp).sum()
                ett = (win * wt * wt).sum()
                ept = (win * wp * wt).sum()
                spp, stt, spt = epp - mp * mp, ett - mt * mt, ept - mp * mt
                vals.append(((2 * mp * mt + C1) * (2 * spt + C2)) /
                            ((mp * mp + mt * mt + C1) * (spp + stt + C2)))
    return 1.0 - float(np.mean(vals))


if __name__ == "__main__":
    key = jax.random.PRNGKey(0)
    k1, k2 = jax.random.split(key)
    B, C, H, W = 2, 4, 16, 16
    pred = jax.random.uniform(k1, (B, C, H, W), dtype=jnp.float32)    # data_range=1.0
    target = jax.random.uniform(k2, (B, C, H, W), dtype=jnp.float32)

    loss = jax.jit(ssim_loss)(pred, target)
    jax.block_until_ready(loss)

    # correctness vs. independent float64 sliding-window reference
    ref = _ssim_loss_ref_np(np.asarray(pred), np.asarray(target))
    assert abs(float(loss) - ref) < 1e-4, f"kernel {float(loss)} vs ref {ref}"

    # sanity: SSIM of identical images == 1  =>  loss == 0
    self_loss = jax.jit(ssim_loss)(pred, pred)
    jax.block_until_ready(self_loss)
    assert abs(float(self_loss)) < 1e-5, f"self-SSIM loss should be ~0, got {float(self_loss)}"

    print("KERNEL_OK")
</pallas_src>

<mosaic_0001>
module attributes {stable_mosaic.version = 11 : i64} {
  func.func @_ssim_tile_kernel(%arg0: i32, %arg1: memref<6x16xf32, #tpu.memory_space<vmem>>, %arg2: memref<16x6xf32, #tpu.memory_space<vmem>>, %arg3: memref<4x16x16xf32, #tpu.memory_space<vmem>>, %arg4: memref<4x16x16xf32, #tpu.memory_space<vmem>>, %arg5: memref<1x1x128xf32, #tpu.memory_space<vmem>>, %arg6: memref<4x16x30xf32, #tpu.memory_space<vmem>>) attributes {dimension_semantics = [#tpu.dimension_semantics<parallel>], iteration_bounds = array<i64: 2>, scalar_prefetch = 0 : i64, scratch_operands = 1 : i64, tpu.core_type = #tpu.core_type<tc>, window_params = [{pipeline_mode = #tpu.pipeline_mode<synchronous>, transform_indices = @transform_0, window_bounds = array<i64: 6, 16>}, {pipeline_mode = #tpu.pipeline_mode<synchronous>, transform_indices = @transform_1, window_bounds = array<i64: 16, 6>}, {transform_indices = @transform_2, window_bounds = array<i64: 4, 16, 16>}, {transform_indices = @transform_3, window_bounds = array<i64: 4, 16, 16>}, {transform_indices = @transform_4, window_bounds = array<i64: 1, 1, 128>}]} {
    %c0 = arith.constant 0 : index
    %c0_0 = arith.constant 0 : index
    %0 = vector.load %arg1[%c0, %c0_0] : memref<6x16xf32, #tpu.memory_space<vmem>>, vector<6x16xf32>
    %c0_1 = arith.constant 0 : index
    %c0_2 = arith.constant 0 : index
    %1 = vector.load %arg2[%c0_1, %c0_2] : memref<16x6xf32, #tpu.memory_space<vmem>>, vector<16x6xf32>
    %c0_3 = arith.constant 0 : index
    %c0_4 = arith.constant 0 : index
    %c0_5 = arith.constant 0 : index
    %2 = vector.load %arg3[%c0_3, %c0_4, %c0_5] : memref<4x16x16xf32, #tpu.memory_space<vmem>>, vector<4x16x16xf32>
    %c0_6 = arith.constant 0 : index
    %c0_7 = arith.constant 0 : index
    %c0_8 = arith.constant 0 : index
    %3 = vector.load %arg4[%c0_6, %c0_7, %c0_8] : memref<4x16x16xf32, #tpu.memory_space<vmem>>, vector<4x16x16xf32>
    %4 = arith.mulf %2, %2 : vector<4x16x16xf32>
    %5 = arith.mulf %3, %3 : vector<4x16x16xf32>
    %6 = arith.mulf %2, %3 : vector<4x16x16xf32>
    %7 = tpu.concatenate %2, %3, %4, %5, %6 in 0 : vector<4x16x16xf32>, vector<4x16x16xf32>, vector<4x16x16xf32>, vector<4x16x16xf32>, vector<4x16x16xf32> -> vector<20x16x16xf32>
    %8 = vector.shape_cast %7 : vector<20x16x16xf32> to vector<320x16xf32>
    %cst = arith.constant dense<0.000000e+00> : vector<320x6xf32>
    %9 = tpu.matmul %8, %1, %cst {dimension_numbers = #tpu.dot_dimension_numbers<[1], [0], [0], [1], [0, 0, 1, 1], [], []>} : vector<320x16xf32>, vector<16x6xf32>, vector<320x6xf32> -> vector<320x6xf32>
    %10 = vector.shape_cast %9 : vector<320x6xf32> to vector<5x4x16x6xf32>
    %11 = vector.extract_strided_slice %10 {offsets = [0, 0, 0, 0], sizes = [1, 4, 16, 6], strides = [1, 1, 1, 1]} : vector<5x4x16x6xf32> to vector<1x4x16x6xf32>
    %12 = vector.shape_cast %11 : vector<1x4x16x6xf32> to vector<4x16x6xf32>
    %13 = vector.extract_strided_slice %10 {offsets = [1, 0, 0, 0], sizes = [1, 4, 16, 6], strides = [1, 1, 1, 1]} : vector<5x4x16x6xf32> to vector<1x4x16x6xf32>
    %14 = vector.shape_cast %13 : vector<1x4x16x6xf32> to vector<4x16x6xf32>
    %15 = vector.extract_strided_slice %10 {offsets = [2, 0, 0, 0], sizes = [1, 4, 16, 6], strides = [1, 1, 1, 1]} : vector<5x4x16x6xf32> to vector<1x4x16x6xf32>
    %16 = vector.shape_cast %15 : vector<1x4x16x6xf32> to vector<4x16x6xf32>
    %17 = vector.extract_strided_slice %10 {offsets = [3, 0, 0, 0], sizes = [1, 4, 16, 6], strides = [1, 1, 1, 1]} : vector<5x4x16x6xf32> to vector<1x4x16x6xf32>
    %18 = vector.shape_cast %17 : vector<1x4x16x6xf32> to vector<4x16x6xf32>
    %19 = vector.extract_strided_slice %10 {offsets = [4, 0, 0, 0], sizes = [1, 4, 16, 6], strides = [1, 1, 1, 1]} : vector<5x4x16x6xf32> to vector<1x4x16x6xf32>
    %20 = vector.shape_cast %19 : vector<1x4x16x6xf32> to vector<4x16x6xf32>
    %21 = tpu.concatenate %12, %14, %16, %18, %20 in 2 : vector<4x16x6xf32>, vector<4x16x6xf32>, vector<4x16x6xf32>, vector<4x16x6xf32>, vector<4x16x6xf32> -> vector<4x16x30xf32>
    %c0_9 = arith.constant 0 : index
    %c0_10 = arith.constant 0 : index
    %c0_11 = arith.constant 0 : index
    %22 = vector.load %arg6[%c0_9, %c0_10, %c0_11] : memref<4x16x30xf32, #tpu.memory_space<vmem>>, vector<4x16x30xf32>
    tpu.vector_store %arg6[%c0_9, %c0_10, %c0_11], %21 {strides = array<i32>} : memref<4x16x30xf32, #tpu.memory_space<vmem>>, vector<4x16x30xf32>,
    %cst_12 = arith.constant 0.000000e+00 : f32
    %23 = vector.broadcast %cst_12 : f32 to vector<6x6xf32>
    %c0_13 = arith.constant 0 : index
    %c0_14 = arith.constant 0 : index
    %c0_15 = arith.constant 0 : index
    %24 = vector.load %arg6[%c0_13, %c0_14, %c0_15] : memref<4x16x30xf32, #tpu.memory_space<vmem>>, vector<1x16x30xf32>
    %25 = vector.shape_cast %24 : vector<1x16x30xf32> to vector<16x30xf32>
    %cst_16 = arith.constant dense<0.000000e+00> : vector<6x30xf32>
    %26 = tpu.matmul %0, %25, %cst_16 {dimension_numbers = #tpu.dot_dimension_numbers<[1], [0], [0], [1], [0, 0, 1, 1], [], []>} : vector<6x16xf32>, vector<16x30xf32>, vector<6x30xf32> -> vector<6x30xf32>
    %27 = vector.extract_strided_slice %26 {offsets = [0, 0], sizes = [6, 6], strides = [1, 1]} : vector<6x30xf32> to vector<6x6xf32>
    %28 = vector.extract_strided_slice %26 {offsets = [0, 6], sizes = [6, 6], strides = [1, 1]} : vector<6x30xf32> to vector<6x6xf32>
    %29 = vector.extract_strided_slice %26 {offsets = [0, 12], sizes = [6, 6], strides = [1, 1]} : vector<6x30xf32> to vector<6x6xf32>
    %30 = vector.extract_strided_slice %26 {offsets = [0, 18], sizes = [6, 6], strides = [1, 1]} : vector<6x30xf32> to vector<6x6xf32>
    %31 = vector.extract_strided_slice %26 {offsets = [0, 24], sizes = [6, 6], strides = [1, 1]} : vector<6x30xf32> to vector<6x6xf32>
    %32 = arith.mulf %27, %27 : vector<6x6xf32>
    %33 = arith.mulf %28, %28 : vector<6x6xf32>
    %34 = arith.mulf %27, %28 : vector<6x6xf32>
    %cst_17 = arith.constant 2.000000e+00 : f32
    %35 = vector.broadcast %cst_17 : f32 to vector<6x6xf32>
    %36 = arith.mulf %35, %34 : vector<6x6xf32>
    %cst_18 = arith.constant 9.99999974E-5 : f32
    %37 = vector.broadcast %cst_18 : f32 to vector<6x6xf32>
    %38 = arith.addf %36, %37 : vector<6x6xf32>
    %39 = arith.subf %31, %34 : vector<6x6xf32>
    %cst_19 = arith.constant 2.000000e+00 : f32
    %40 = vector.broadcast %cst_19 : f32 to vector<6x6xf32>
    %41 = arith.mulf %40, %39 : vector<6x6xf32>
    %cst_20 = arith.constant 8.99999984E-4 : f32
    %42 = vector.broadcast %cst_20 : f32 to vector<6x6xf32>
    %43 = arith.addf %41, %42 : vector<6x6xf32>
    %44 = arith.mulf %38, %43 : vector<6x6xf32>
    %45 = arith.addf %32, %33 : vector<6x6xf32>
    %cst_21 = arith.constant 9.99999974E-5 : f32
    %46 = vector.broadcast %cst_21 : f32 to vector<6x6xf32>
    %47 = arith.addf %45, %46 : vector<6x6xf32>
    %48 = arith.subf %29, %32 : vector<6x6xf32>
    %49 = arith.subf %30, %33 : vector<6x6xf32>
    %50 = arith.addf %48, %49 : vector<6x6xf32>
    %cst_22 = arith.constant 8.99999984E-4 : f32
    %51 = vector.broadcast %cst_22 : f32 to vector<6x6xf32>
    %52 = arith.addf %50, %51 : vector<6x6xf32>
    %53 = arith.mulf %47, %52 : vector<6x6xf32>
    %54 = arith.divf %44, %53 : vector<6x6xf32>
    %55 = arith.addf %23, %54 : vector<6x6xf32>
    %c1 = arith.constant 1 : index
    %c0_23 = arith.constant 0 : index
    %c0_24 = arith.constant 0 : index
    %56 = vector.load %arg6[%c1, %c0_23, %c0_24] : memref<4x16x30xf32, #tpu.memory_space<vmem>>, vector<1x16x30xf32>
    %57 = vector.shape_cast %56 : vector<1x16x30xf32> to vector<16x30xf32>
    %cst_25 = arith.constant dense<0.000000e+00> : vector<6x30xf32>
    %58 = tpu.matmul %0, %57, %cst_25 {dimension_numbers = #tpu.dot_dimension_numbers<[1], [0], [0], [1], [0, 0, 1, 1], [], []>} : vector<6x16xf32>, vector<16x30xf32>, vector<6x30xf32> -> vector<6x30xf32>
    %59 = vector.extract_strided_slice %58 {offsets = [0, 0], sizes = [6, 6], strides = [1, 1]} : vector<6x30xf32> to vector<6x6xf32>
    %60 = vector.extract_strided_slice %58 {offsets = [0, 6], sizes = [6, 6], strides = [1, 1]} : vector<6x30xf32> to vector<6x6xf32>
    %61 = vector.extract_strided_slice %58 {offsets = [0, 12], sizes = [6, 6], strides = [1, 1]} : vector<6x30xf32> to vector<6x6xf32>
    %62 = vector.extract_strided_slice %58 {offsets = [0, 18], sizes = [6, 6], strides = [1, 1]} : vector<6x30xf32> to vector<6x6xf32>
    %63 = vector.extract_strided_slice %58 {offsets = [0, 24], sizes = [6, 6], strides = [1, 1]} : vector<6x30xf32> to vector<6x6xf32>
    %64 = arith.mulf %59, %59 : vector<6x6xf32>
    %65 = arith.mulf %60, %60 : vector<6x6xf32>
    %66 = arith.mulf %59, %60 : vector<6x6xf32>
    %cst_26 = arith.constant 2.000000e+00 : f32
    %67 = vector.broadcast %cst_26 : f32 to vector<6x6xf32>
    %68 = arith.mulf %67, %66 : vector<6x6xf32>
    %cst_27 = arith.constant 9.99999974E-5 : f32
    %69 = vector.broadcast %cst_27 : f32 to vector<6x6xf32>
    %70 = arith.addf %68, %69 : vector<6x6xf32>
    %71 = arith.subf %63, %66 : vector<6x6xf32>
    %cst_28 = arith.constant 2.000000e+00 : f32
    %72 = vector.broadcast %cst_28 : f32 to vector<6x6xf32>
    %73 = arith.mulf %72, %71 : vector<6x6xf32>
    %cst_29 = arith.constant 8.99999984E-4 : f32
    %74 = vector.broadcast %cst_29 : f32 to vector<6x6xf32>
    %75 = arith.addf %73, %74 : vector<6x6xf32>
    %76 = arith.mulf %70, %75 : vector<6x6xf32>
    %77 = arith.addf %64, %65 : vector<6x6xf32>
    %cst_30 = arith.constant 9.99999974E-5 : f32
    %78 = vector.broadcast %cst_30 : f32 to vector<6x6xf32>
    %79 = arith.addf %77, %78 : vector<6x6xf32>
    %80 = arith.subf %61, %64 : vector<6x6xf32>
    %81 = arith.subf %62, %65 : vector<6x6xf32>
    %82 = arith.addf %80, %81 : vector<6x6xf32>
    %cst_31 = arith.constant 8.99999984E-4 : f32
    %83 = vector.broadcast %cst_31 : f32 to vector<6x6xf32>
    %84 = arith.addf %82, %83 : vector<6x6xf32>
    %85 = arith.mulf %79, %84 : vector<6x6xf32>
    %86 = arith.divf %76, %85 : vector<6x6xf32>
    %87 = arith.addf %55, %86 : vector<6x6xf32>
    %c2 = arith.constant 2 : index
    %c0_32 = arith.constant 0 : index
    %c0_33 = arith.constant 0 : index
    %88 = vector.load %arg6[%c2, %c0_32, %c0_33] : memref<4x16x30xf32, #tpu.memory_space<vmem>>, vector<1x16x30xf32>
    %89 = vector.shape_cast %88 : vector<1x16x30xf32> to vector<16x30xf32>
    %cst_34 = arith.constant dense<0.000000e+00> : vector<6x30xf32>
    %90 = tpu.matmul %0, %89, %cst_34 {dimension_numbers = #tpu.dot_dimension_numbers<[1], [0], [0], [1], [0, 0, 1, 1], [], []>} : vector<6x16xf32>, vector<16x30xf32>, vector<6x30xf32> -> vector<6x30xf32>
    %91 = vector.extract_strided_slice %90 {offsets = [0, 0], sizes = [6, 6], strides = [1, 1]} : vector<6x30xf32> to vector<6x6xf32>
    %92 = vector.extract_strided_slice %90 {offsets = [0, 6], sizes = [6, 6], strides = [1, 1]} : vector<6x30xf32> to vector<6x6xf32>
    %93 = vector.extract_strided_slice %90 {offsets = [0, 12], sizes = [6, 6], strides = [1, 1]} : vector<6x30xf32> to vector<6x6xf32>
    %94 = vector.extract_strided_slice %90 {offsets = [0, 18], sizes = [6, 6], strides = [1, 1]} : vector<6x30xf32> to vector<6x6xf32>
    %95 = vector.extract_strided_slice %90 {offsets = [0, 24], sizes = [6, 6], strides = [1, 1]} : vector<6x30xf32> to vector<6x6xf32>
    %96 = arith.mulf %91, %91 : vector<6x6xf32>
    %97 = arith.mulf %92, %92 : vector<6x6xf32>
    %98 = arith.mulf %91, %92 : vector<6x6xf32>
    %cst_35 = arith.constant 2.000000e+00 : f32
    %99 = vector.broadcast %cst_35 : f32 to vector<6x6xf32>
    %100 = arith.mulf %99, %98 : vector<6x6xf32>
    %cst_36 = arith.constant 9.99999974E-5 : f32
    %101 = vector.broadcast %cst_36 : f32 to vector<6x6xf32>
    %102 = arith.addf %100, %101 : vector<6x6xf32>
    %103 = arith.subf %95, %98 : vector<6x6xf32>
    %cst_37 = arith.constant 2.000000e+00 : f32
    %104 = vector.broadcast %cst_37 : f32 to vector<6x6xf32>
    %105 = arith.mulf %104, %103 : vector<6x6xf32>
    %cst_38 = arith.constant 8.99999984E-4 : f32
    %106 = vector.broadcast %cst_38 : f32 to vector<6x6xf32>
    %107 = arith.addf %105, %106 : vector<6x6xf32>
    %108 = arith.mulf %102, %107 : vector<6x6xf32>
    %109 = arith.addf %96, %97 : vector<6x6xf32>
    %cst_39 = arith.constant 9.99999974E-5 : f32
    %110 = vector.broadcast %cst_39 : f32 to vector<6x6xf32>
    %111 = arith.addf %109, %110 : vector<6x6xf32>
    %112 = arith.subf %93, %96 : vector<6x6xf32>
    %113 = arith.subf %94, %97 : vector<6x6xf32>
    %114 = arith.addf %112, %113 : vector<6x6xf32>
    %cst_40 = arith.constant 8.99999984E-4 : f32
    %115 = vector.broadcast %cst_40 : f32 to vector<6x6xf32>
    %116 = arith.addf %114, %115 : vector<6x6xf32>
    %117 = arith.mulf %111, %116 : vector<6x6xf32>
    %118 = arith.divf %108, %117 : vector<6x6xf32>
    %119 = arith.addf %87, %118 : vector<6x6xf32>
    %c3 = arith.constant 3 : index
    %c0_41 = arith.constant 0 : index
    %c0_42 = arith.constant 0 : index
    %120 = vector.load %arg6[%c3, %c0_41, %c0_42] : memref<4x16x30xf32, #tpu.memory_space<vmem>>, vector<1x16x30xf32>
    %121 = vector.shape_cast %120 : vector<1x16x30xf32> to vector<16x30xf32>
    %cst_43 = arith.constant dense<0.000000e+00> : vector<6x30xf32>
    %122 = tpu.matmul %0, %121, %cst_43 {dimension_numbers = #tpu.dot_dimension_numbers<[1], [0], [0], [1], [0, 0, 1, 1], [], []>} : vector<6x16xf32>, vector<16x30xf32>, vector<6x30xf32> -> vector<6x30xf32>
    %123 = vector.extract_strided_slice %122 {offsets = [0, 0], sizes = [6, 6], strides = [1, 1]} : vector<6x30xf32> to vector<6x6xf32>
    %124 = vector.extract_strided_slice %122 {offsets = [0, 6], sizes = [6, 6], strides = [1, 1]} : vector<6x30xf32> to vector<6x6xf32>
    %125 = vector.extract_strided_slice %122 {offsets = [0, 12], sizes = [6, 6], strides = [1, 1]} : vector<6x30xf32> to vector<6x6xf32>
    %126 = vector.extract_strided_slice %122 {offsets = [0, 18], sizes = [6, 6], strides = [1, 1]} : vector<6x30xf32> to vector<6x6xf32>
    %127 = vector.extract_strided_slice %122 {offsets = [0, 24], sizes = [6, 6], strides = [1, 1]} : vector<6x30xf32> to vector<6x6xf32>
    %128 = arith.mulf %123, %123 : vector<6x6xf32>
    %129 = arith.mulf %124, %124 : vector<6x6xf32>
    %130 = arith.mulf %123, %124 : vector<6x6xf32>
    %cst_44 = arith.constant 2.000000e+00 : f32
    %131 = vector.broadcast %cst_44 : f32 to vector<6x6xf32>
    %132 = arith.mulf %131, %130 : vector<6x6xf32>
    %cst_45 = arith.constant 9.99999974E-5 : f32
    %133 = vector.broadcast %cst_45 : f32 to vector<6x6xf32>
    %134 = arith.addf %132, %133 : vector<6x6xf32>
    %135 = arith.subf %127, %130 : vector<6x6xf32>
    %cst_46 = arith.constant 2.000000e+00 : f32
    %136 = vector.broadcast %cst_46 : f32 to vector<6x6xf32>
    %137 = arith.mulf %136, %135 : vector<6x6xf32>
    %cst_47 = arith.constant 8.99999984E-4 : f32
    %138 = vector.broadcast %cst_47 : f32 to vector<6x6xf32>
    %139 = arith.addf %137, %138 : vector<6x6xf32>
    %140 = arith.mulf %134, %139 : vector<6x6xf32>
    %141 = arith.addf %128, %129 : vector<6x6xf32>
    %cst_48 = arith.constant 9.99999974E-5 : f32
    %142 = vector.broadcast %cst_48 : f32 to vector<6x6xf32>
    %143 = arith.addf %141, %142 : vector<6x6xf32>
    %144 = arith.subf %125, %128 : vector<6x6xf32>
    %145 = arith.subf %126, %129 : vector<6x6xf32>
    %146 = arith.addf %144, %145 : vector<6x6xf32>
    %cst_49 = arith.constant 8.99999984E-4 : f32
    %147 = vector.broadcast %cst_49 : f32 to vector<6x6xf32>
    %148 = arith.addf %146, %147 : vector<6x6xf32>
    %149 = arith.mulf %143, %148 : vector<6x6xf32>
    %150 = arith.divf %140, %149 : vector<6x6xf32>
    %151 = arith.addf %119, %150 : vector<6x6xf32>
    %152 = vector.shape_cast %151 : vector<6x6xf32> to vector<1x6x6xf32>
    %cst_50 = arith.constant dense<0.000000e+00> : vector<1xf32>
    %153 = vector.multi_reduction <add>, %152, %cst_50 [1, 2] : vector<1x6x6xf32> to vector<1xf32>
    %154 = vector.shape_cast %153 : vector<1xf32> to vector<1x1x1xf32>
    %155 = vector.extract %154[0, 0, 0] : f32 from vector<1x1x1xf32>
    %156 = vector.broadcast %155 : f32 to vector<1x1x128xf32>
    %c0_51 = arith.constant 0 : index
    %c0_52 = arith.constant 0 : index
    %c0_53 = arith.constant 0 : index
    %157 = vector.load %arg5[%c0_51, %c0_52, %c0_53] : memref<1x1x128xf32, #tpu.memory_space<vmem>>, vector<1x1x128xf32>
    tpu.vector_store %arg5[%c0_51, %c0_52, %c0_53], %156 {strides = array<i32>} : memref<1x1x128xf32, #tpu.memory_space<vmem>>, vector<1x1x128xf32>,
    return
  }
  func.func @transform_0(%arg0: i32) -> (i32, i32) {
    %c0_i32 = arith.constant 0 : i32
    %c0_i32_0 = arith.constant 0 : i32
    %c0_i32_1 = arith.constant 0 : i32
    return %c0_i32, %c0_i32_0 : i32, i32
  }
  func.func @transform_1(%arg0: i32) -> (i32, i32) {
    %c0_i32 = arith.constant 0 : i32
    %c0_i32_0 = arith.constant 0 : i32
    %c0_i32_1 = arith.constant 0 : i32
    return %c0_i32, %c0_i32_0 : i32, i32
  }
  func.func @transform_2(%arg0: i32) -> (i32, i32, i32) {
    %c0_i32 = arith.constant 0 : i32
    %c0_i32_0 = arith.constant 0 : i32
    %c0_i32_1 = arith.constant 0 : i32
    return %arg0, %c0_i32, %c0_i32_0 : i32, i32, i32
  }
  func.func @transform_3(%arg0: i32) -> (i32, i32, i32) {
    %c0_i32 = arith.constant 0 : i32
    %c0_i32_0 = arith.constant 0 : i32
    %c0_i32_1 = arith.constant 0 : i32
    return %arg0, %c0_i32, %c0_i32_0 : i32, i32, i32
  }
  func.func @transform_4(%arg0: i32) -> (i32, i32, i32) {
    %c0_i32 = arith.constant 0 : i32
    %c0_i32_0 = arith.constant 0 : i32
    %c0_i32_1 = arith.constant 0 : i32
    return %arg0, %c0_i32, %c0_i32_0 : i32, i32, i32
  }
}

</mosaic_0001>

<bundles_post_ra>
// kernel: ssim_loss.1
= control target key start
LH: loop header
LB: loop body
LE: loop exit
PB: predicated region body
PF: predicated region fallthrough
CT: control target
= control target key end

     0   :  { %9 = vsyncpa [#allocation4], 0  ;;  %s2299_s0 = inlined_call_operand.vmem [shape: f32[6,16], index: 0, kind: input, shape index: {}]   ;;  %s2300_s1 = inlined_call_operand.vmem [shape: f32[16,6], index: 1, kind: input, shape index: {}]   ;;  %s2301_s2 = inlined_call_operand.hbm [shape: f32[8,16,16], index: 2, kind: input, shape index: {}]   ;;  %s2302_s3 = inlined_call_operand.hbm [shape: f32[8,16,16], index: 3, kind: input, shape index: {}]   ;;  %s2303_s4 = inlined_call_operand.vmem [shape: f32[2,1,128], index: 4, kind: output, shape index: {}]  }
   0x1   :  { %11 = vsyncpa [#allocation4 + $0x1], 0 }
   0x2   :  { %12 = vsyncpa [#allocation6], 0 }
   0x3   :  { %14 = vsyncpa [#allocation6 + $0x1], 0  ;;  %s1858_s15 = smov 0   ;;  %s1860_s16 = smov 0  }
   0x4   :  { %s1862_s17 = smov 0   ;;  %s1864_s18 = smov 0  }
   0x5 LB: > { %s1877_s19 = sadd.s32 4294967295, %s1817_s18   ;;  %s1880_s20 = sadd.s32 1, %s1817_s18   ;;  %s1817_s18 = sphi %s1864_s18, %s2313_s18   ;;  %s1813_s17 = sphi %s1862_s17, %s2312_s17   ;;  %s1809_s16 = sphi %s1860_s16, %s2311_s16   ;;  %s1805_s15 = sphi %s1858_s15, %s2310_s15  }
   0x6   : > { %s66_s21 = ssub.s32 %s1817_s18, %s1880_s20  ;;  %s69_s22 = sadd.s32 1, %s1813_s17 }
   0x7   : > { %p67_p0 = scmp.eq.s32.totalorder %s66_s21, 0  ;;  %p76_p1 = scmp.ne.s32.totalorder %s1813_s17, %s1809_s16 }
   0x8   : > { %p77_p2 = scmp.eq.s32.totalorder %s1817_s18, 0  ;;  %p82_p3 = scmp.ne.s32.totalorder %s1809_s16, %s1805_s15 }
   0x9   : > { %s1890_s23 = scalar_select %p67_p0, %s1813_s17, %s69_s22  }
   0xa   : > { %p78_p4 = por %p77_p2, %p76_p1  ;;  %p83_p5 = scmp.eq.s32.totalorder %s1877_s19, 0 }
   0xb   : > { %p1666_p6 = scmp.lt.s32.totalorder %s1817_s18, 2  ;;  %s1899_s25 = sand.u32 1, %s1813_s17  }
   0xc   : > { %p1894_p7 = por %p83_p5, %p82_p3  ;;  %s1428_s26 = sshll.u32 %s1899_s25, 6 }
   0xd   : > { %s1486_s27 = sshll.u32 %s1817_s18, 10  ;;  %s168_s5 = scalar_lea.vmem [#allocation3], %s1428_s26 }
   0xe   : > { %s2305_s24 = scalar_select %p1894_p7, 1, 0 }
   0xf   : > { %s1908_s30 = scalar_lea.hbm %s2301_s2, %s1486_s27  ;;  %s176_s6 = sshll.u32 %s168_s5, 4  ;;  %s1912_s6 = int_to_ptr.vmem [resolvable:$true] %s176_s6 }
  0x10   : > { %p1914_p8 = pnand %p1666_p6, %p78_p4  ;;  %s165_s8 = scalar_lea.sflag [#allocation4], %s1899_s25 }
  0x11   : > { %s1719_s9 = scalar_lea.hbm %s1908_s30, 1024  ;;  %s1724_s12 = scalar_lea.hbm %s2301_s2, 2048 }
  0x12   : > { %p1720_p10 = scmp.ne.s32.totalorder %s1908_s30, %s1719_s9  ;;  %p1721_p11 = pneg %p1914_p8 }
  0x13   : > { %p1725_p0 = scmp.lt.u32.totalorder %s1908_s30, %s2301_s2  ;;  %p1726_p1 = scmp.lt.u32.totalorder %s1724_s12, %s1719_s9 }
  0x14   : > { %p1722_p12 = pnand %p1721_p11, %p1720_p10  ;;  %p1728_p3 = scmp.lt.u32.totalorder %s1719_s9, %s1908_s30 }
  0x15   : > { %p1727_p2 = por %p1726_p1, %p1725_p0 }
  0x16   : > { %p1723_p13 = pneg %p1722_p12 }
  0x17   : > { %p1729_p4 = por %p1728_p3, %p1727_p2 }
  0x19   : > { %p1730_p5 = pnand %p1729_p4, %p1723_p13 }
  0x1b   : > { %1733 = shalt.err (!%p1730_p5)
}
  0x1c   : > { %s1734_s15 = scalar_lea.vmem %s1912_s6, 1024  ;;  %s1819_s21 = smov [#allocation3]  }
  0x1d   : > { %p1735_p6 = scmp.ne.s32.totalorder %s1912_s6, %s1734_s15  ;;  %s1739_s22 = sshll.u32 %s1819_s21, 4  ;;  %s1740_s22 = int_to_ptr.vmem [resolvable:$false] %s1739_s22 }
  0x1e   : > { %s1741_s28 = scalar_lea.vmem %s1740_s22, 2048  ;;  %p1742_p9 = scmp.lt.s32.totalorder %s1912_s6, %s1740_s22 }
  0x1f   : > { %p1737_p10 = pnand %p1735_p6, %p1721_p11  ;;  %p1743_p0 = scmp.lt.s32.totalorder %s1741_s28, %s1734_s15 }
  0x21   : > { %p1738_p12 = pneg %p1737_p10  ;;  %p1744_p1 = por %p1743_p0, %p1742_p9 }
  0x23   : > { %p1745_p2 = pnand %p1744_p1, %p1738_p12 }
  0x25   : > { %1748 = shalt.err (!%p1745_p2)
}
  0x26   : > { %s1820_s29 = smov 128   ;;  %s1821_s5 = smov 8  }
  0x27   : > { %1662 = dma.hbm_to_vmem [thread:$0]  (!%p1914_p8), %s1908_s30, 1024, %s1912_s6, %s165_s8, %s1820_s29, %s1820_s29, %s1821_s5  }
  0x28   : > { %p206_p9 = scmp.lt.s32.totalorder %s1817_s18, 3  ;;  %s1956_s11 = scalar_lea.hbm %s2302_s3, %s1486_s27 }
  0x29   : > { %p2307_p13 = scmp.ge.s32.totalorder %s1817_s18, 1  ;;  %s190_s13 = scalar_lea.vmem [#allocation5], %s1428_s26 }
  0x2a   : > { %s198_s14 = sshll.u32 %s190_s13, 4  ;;  %s187_s30 = scalar_lea.sflag [#allocation6], %s1899_s25  ;;  %s1966_s14 = int_to_ptr.vmem [resolvable:$true] %s198_s14 }
  0x2b   : > { %p1960_p3 = pnand %p2307_p13, %p206_p9  ;;  %s1749_s6 = scalar_lea.hbm %s1956_s11, 1024 }
  0x2c   : > { %p1750_p4 = scmp.ne.s32.totalorder %s1956_s11, %s1749_s6  ;;  %s1754_s8 = scalar_lea.hbm %s2302_s3, 2048 }
  0x2d   : > { %p1755_p10 = scmp.lt.u32.totalorder %s1956_s11, %s2302_s3  ;;  %p1756_p12 = scmp.lt.u32.totalorder %s1754_s8, %s1749_s6 }
  0x2e   : > { %p1752_p5 = pnand %p1750_p4, %p1721_p11  ;;  %p1758_p1 = scmp.lt.u32.totalorder %s1749_s6, %s1956_s11 }
  0x2f   : > { %p1757_p0 = por %p1756_p12, %p1755_p10 }
  0x30   : > { %p1753_p6 = pneg %p1752_p5 }
  0x31   : > { %p1759_p2 = por %p1758_p1, %p1757_p0 }
  0x33   : > { %p1760_p9 = pnand %p1759_p2, %p1753_p6 }
  0x35   : > { %1763 = shalt.err (!%p1760_p9)
}
  0x36   : > { %s1764_s26 = scalar_lea.vmem %s1966_s14, 1024  ;;  %s1822_s22 = smov [#allocation5]  }
  0x37   : > { %p1765_p13 = scmp.ne.s32.totalorder %s1966_s14, %s1764_s26  ;;  %s1769_s28 = sshll.u32 %s1822_s22, 4  ;;  %s1770_s28 = int_to_ptr.vmem [resolvable:$false] %s1769_s28 }
  0x38   : > { %s1771_s9 = scalar_lea.vmem %s1770_s28, 2048  ;;  %p1772_p7 = scmp.lt.s32.totalorder %s1966_s14, %s1770_s28 }
  0x39   : > { %p1767_p4 = pnand %p1765_p13, %p1721_p11  ;;  %p1773_p10 = scmp.lt.s32.totalorder %s1771_s9, %s1764_s26 }
  0x3b   : > { %p1768_p5 = pneg %p1767_p4  ;;  %p1774_p12 = por %p1773_p10, %p1772_p7 }
  0x3d   : > { %p1775_p0 = pnand %p1774_p12, %p1768_p5 }
  0x3f   : > { %1778 = shalt.err (!%p1775_p0)
}
  0x40   : > { %1665 = dma.hbm_to_vmem [thread:$0]  (!%p1914_p8), %s1956_s11, 1024, %s1966_s14, %s187_s30, %s1820_s29, %s1820_s29, %s1821_s5  }
  0x41   : > { %210 = sbr.rel (%p1960_p3) target bundleno = 1273 (0x4f9), region = 36  ;;  %s212_s10 = sand.u32 (!%p1960_p3), 1, %s1809_s16  }
  0x42   : > { %s1437_s13 = sshll.u32 (!%p1960_p3), %s212_s10, 6  ;;  %s213_s6 = scalar_lea.sflag (!%p1960_p3), [#allocation4], %s212_s10 }
  0x43   : > { %s2000_s18 = scalar_lea.vmem (!%p1960_p3), [#allocation3], %s1437_s13  ;;  %p2309_p7 = scmp.ne.s32.totalorder (!%p1960_p3), %s2305_s24, 0 }
  0x48   : > { %1796 = dma.done.wait (%p2309_p7), %s213_s6, 1024  }
  0x49   : > { %1798 = vsyncadd (%p2309_p7), %s213_s6, 4294966272  ;;  %s222_s25 = scalar_lea.sflag [#allocation6], %s212_s10  ;;  %s2006_s7 = scalar_lea.vmem [#allocation5], %s1437_s13 }
  0x4a   : > { %1800 = dma.done.wait (%p2309_p7), %s222_s25, 1024  }
  0x4b   : > { %1802 = vsyncadd (%p2309_p7), %s222_s25, 4294966272  ;;  %vm301_vm0 = vcmask 130048   ;;  %v259_v0 = vld [vmem:[%s2300_s1] sm:$0xff]  ;;  %v260_v1 = vld [vmem:[%s2300_s1 + $0x8] sm:$0xff]  ;;  %s1823_s24 = smov 18   ;;  %s1824_s14 = smov 24  }
  0x4c   : > { %v2019_v2 = vld [vmem:[%s2000_s18] sm:$0xff]  ;;  %v1635_v3 = vpack.c.bf16 %v260_v1, %v259_v0  ;;  %v270_v5 = vld [vmem:[%s2006_s7 + $0x8] sm:$0xff]  ;;  %v271_v7 = vld [vmem:[%s2006_s7 + $0x10] sm:$0xff]  ;;  %s1825_s30 = smov 6   ;;  %s1826_s27 = smov 12   ;;  %vm1828_vm1 = vmmov 0  }
  0x4d   : > { %1547 = vmatprep.mubr.msk.f32.mxu0 %vm301_vm0, %v2019_v2  ;;  %v269_v4 = vld [vmem:[%s2006_s7] sm:$0xff]  ;;  %v286_v8 = vmul.f32 %v270_v5, %v270_v5  ;;  %v262_v9 = vld [vmem:[%s2000_s18 + $0x8] sm:$0xff]  ;;  %v287_v10 = vmul.f32 %v271_v7, %v271_v7  ;;  %v272_v11 = vld [vmem:[%s2006_s7 + $0x18] sm:$0xff]  ;;  %v277_v35 = vmul.f32 %v2019_v2, %v2019_v2  ;;  %vm815_vm2 = vcmask 48128   ;;  %s1830_s21 = smov 122   ;;  %s1831_s26 = smov 116  }
  0x4e   : > { %v285_v6 = vmul.f32 %v269_v4, %v269_v4  ;;  %1636 = vmatprep.subr.bf16.mxu0 %v1635_v3  ;;  %1651 = vmatprep.subr.bf16.mxu1 %v1635_v3  ;;  %v263_v12 = vld [vmem:[%s2000_s18 + $0x10] sm:$0xff]  ;;  %v273_v13 = vld [vmem:[%s2006_s7 + $0x20] sm:$0xff]  ;;  %v288_v14 = vmul.f32 %v272_v11, %v272_v11  ;;  %v264_v15 = vld [vmem:[%s2000_s18 + $0x18] sm:$0xff]  ;;  %v293_v26 = vmul.f32 %v269_v4, %v2019_v2  ;;  %vm824_vm3 = vcmask 97280   ;;  %s1832_s22 = smov 104   ;;  %p255_p8 = scmp.lt.s32.totalorder %s1877_s19, 1 }
  0x4f   : > { %1638 = vmatpush3.bf16.msra.mxu0 %v1635_v3  ;;  %1652 = vmatpush3.bf16.msra.mxu1 %v1635_v3  ;;  %v289_v16 = vmul.f32 %v273_v13, %v273_v13  ;;  %v274_v17 = vld [vmem:[%s2006_s7 + $0x28] sm:$0xff]  ;;  %v265_v18 = vld [vmem:[%s2000_s18 + $0x20] sm:$0xff]  ;;  %v275_v19 = vld [vmem:[%s2006_s7 + $0x30] sm:$0xff]  ;;  %v294_v28 = vmul.f32 %v270_v5, %v262_v9  ;;  %v295_v29 = vmul.f32 %v271_v7, %v263_v12  ;;  %vm833_vm4 = vcmask 146432  }
  0x50   : > { %1583 = vmatprep.mubr.msk.f32.mxu1 %vm301_vm0, %v285_v6  ;;  %v290_v20 = vmul.f32 %v274_v17, %v274_v17  ;;  %v266_v21 = vld [vmem:[%s2000_s18 + $0x28] sm:$0xff]  ;;  %v291_v22 = vmul.f32 %v275_v19, %v275_v19  ;;  %v276_v23 = vld [vmem:[%s2006_s7 + $0x38] sm:$0xff]  ;;  %v267_v24 = vld [vmem:[%s2000_s18 + $0x30] sm:$0xff]  ;;  %v296_v30 = vmul.f32 %v272_v11, %v264_v15  ;;  %v297_v31 = vmul.f32 %v273_v13, %v265_v18  ;;  %s2315_s19 = smov (!%p255_p8, %s1877_s19), 1 }
  0x51   : > { %v292_v25 = vmul.f32 %v276_v23, %v276_v23  ;;  %v268_v27 = vld [vmem:[%s2000_s18 + $0x38] sm:$0xff]  ;;  %v298_v32 = vmul.f32 %v274_v17, %v266_v21  ;;  %v299_v33 = vmul.f32 %v275_v19, %v267_v24  ;;  %v278_v36 = vmul.f32 %v262_v9, %v262_v9  ;;  %s257_s10 = scalar_lea.vmem %s2303_s4, %s2315_s19 }
  0x52   : > { %1548 = vmatmul.mubr.msk.f32.vlgmr.msra.gmra.mrb[0].mxu0 %vm301_vm0, %v262_v9  ;;  %1584 = vmatmul.mubr.msk.f32.vlgmr.msra.gmra.mrb[0].mxu1 %vm301_vm0, %v286_v8  ;;  %v300_v34 = vmul.f32 %v276_v23, %v268_v27  ;;  %v279_v37 = vmul.f32 %v263_v12, %v263_v12  ;;  %v280_v38 = vmul.f32 %v264_v15, %v264_v15  ;;  %vm842_vm5 = vcmask 195584  }
  0x53   : > { %1550 = vmatprep.mubr.msk.f32.mxu0 %vm301_vm0, %v263_v12  ;;  %1586 = vmatprep.mubr.msk.f32.mxu1 %vm301_vm0, %v287_v10  ;;  %v281_v39 = vmul.f32 %v265_v18, %v265_v18  ;;  %v282_v40 = vmul.f32 %v266_v21, %v266_v21  ;;  %v283_v41 = vmul.f32 %v267_v24, %v267_v24  ;;  %vm851_vm6 = vcmask 244736  }
  0x54   : > { %v284_v42 = vmul.f32 %v268_v27, %v268_v27  ;;  %vm1330_vm7 = vcmask 46080  }
  0x56   : > { %1551 = vmatmul.mubr.msk.f32.gmra.mrb[2].mxu0 %vm301_vm0, %v264_v15  ;;  %1587 = vmatmul.mubr.msk.f32.gmra.mrb[2].mxu1 %vm301_vm0, %v288_v14 }
  0x57   : > { %1553 = vmatprep.mubr.msk.f32.mxu0 %vm301_vm0, %v265_v18  ;;  %1589 = vmatprep.mubr.msk.f32.mxu1 %vm301_vm0, %v289_v16  ;;  %v1827_v18 = vmov 0.0|0.0  }
  0x58   : > { %1639 = vmatprep.subr.bf16.mxu1 %v1827_v18 }
  0x5a   : > { %1554 = vmatmul.mubr.msk.f32.gmra.mrb[4].mxu0 %vm301_vm0, %v266_v21  ;;  %1590 = vmatmul.mubr.msk.f32.gmra.mrb[4].mxu1 %vm301_vm0, %v290_v20  ;;  %v1829_v20 = vmov 0.0  }
  0x5b   : > { %1556 = vmatprep.mubr.msk.f32.mxu0 %vm301_vm0, %v267_v24  ;;  %1592 = vmatprep.mubr.msk.f32.mxu1 %vm301_vm0, %v291_v22 }
  0x5e   : > { %1557 = vmatmul.mubr.msk.f32.gmra.mrb[6].mxu0 %vm301_vm0, %v268_v27  ;;  %1593 = vmatmul.mubr.msk.f32.gmra.mrb[6].mxu1 %vm301_vm0, %v292_v25 }
  0x5f   : > { %1559 = vmatprep.mubr.msk.f32.mxu0 %vm301_vm0, %v269_v4  ;;  %1595 = vmatprep.mubr.msk.f32.mxu1 %vm301_vm0, %v293_v26 }
  0x62   : > { %1560 = vmatmul.mubr.msk.f32.gmra.mrb[8].mxu0 %vm301_vm0, %v270_v5  ;;  %1596 = vmatmul.mubr.msk.f32.gmra.mrb[8].mxu1 %vm301_vm0, %v294_v28 }
  0x63   : > { %1562 = vmatprep.mubr.msk.f32.mxu0 %vm301_vm0, %v271_v7  ;;  %1598 = vmatprep.mubr.msk.f32.mxu1 %vm301_vm0, %v295_v29 }
  0x66   : > { %1563 = vmatmul.mubr.msk.f32.gmra.mrb[10].mxu0 %vm301_vm0, %v272_v11  ;;  %1599 = vmatmul.mubr.msk.f32.gmra.mrb[10].mxu1 %vm301_vm0, %v296_v30 }
  0x67   : > { %1565 = vmatprep.mubr.msk.f32.mxu0 %vm301_vm0, %v273_v13  ;;  %1601 = vmatprep.mubr.msk.f32.mxu1 %vm301_vm0, %v297_v31 }
  0x6a   : > { %1566 = vmatmul.mubr.msk.f32.gmra.mrb[12].mxu0 %vm301_vm0, %v274_v17  ;;  %1602 = vmatmul.mubr.msk.f32.gmra.mrb[12].mxu1 %vm301_vm0, %v298_v32 }
  0x6b   : > { %1568 = vmatprep.mubr.msk.f32.mxu0 %vm301_vm0, %v275_v19  ;;  %1604 = vmatprep.mubr.msk.f32.mxu1 %vm301_vm0, %v299_v33 }
  0x6e   : > { %1569 = vmatmul.mubr.msk.f32.gmra.mrb[14].mxu0 %vm301_vm0, %v276_v23  ;;  %1605 = vmatmul.mubr.msk.f32.gmra.mrb[14].mxu1 %vm301_vm0, %v300_v34 }
  0x6f   : > { %1571 = vmatprep.mubr.msk.f32.mxu0 %vm301_vm0, %v277_v35  ;;  %1611 = vmatprep.mubr.msk.f32.mxu1 %vm1828_vm1, %v1829_v20 }
  0x72   : > { %1572 = vmatmul.mubr.msk.f32.gmra.mrb[16].mxu0 %vm301_vm0, %v278_v36 }
  0x73   : > { %1574 = vmatprep.mubr.msk.f32.mxu0 %vm301_vm0, %v279_v37 }
  0x76   : > { %1575 = vmatmul.mubr.msk.f32.gmra.mrb[18].mxu0 %vm301_vm0, %v280_v38 }
  0x77   : > { %1577 = vmatprep.mubr.msk.f32.mxu0 %vm301_vm0, %v281_v39 }
  0x7a   : > { %1578 = vmatmul.mubr.msk.f32.gmra.mrb[20].mxu0 %vm301_vm0, %v282_v40 }
  0x7b   : > { %1580 = vmatprep.mubr.msk.f32.mxu0 %vm301_vm0, %v283_v41 }
  0x7e   : > { %1581 = vmatmul.mubr.msk.f32.gmra.mrb[22].mxu0 %vm301_vm0, %v284_v42 }
 0x125   : > { %v2080_v43 = vpop.f32.mrb[0].mxu0  ;;  %v1585_v44 = vpop.f32.mrb[0].mxu1 }
 0x126   : > { %761 = vrot.lane.b32.xlu1 %v1585_v44, %s1823_s24  ;;  %v2082_v45 = vpop.f32.mrb[1].mxu0  ;;  %v608_v46 = vpop.f32.mrb[1].mxu1 }
 0x127   : > { %759 = vrot.lane.b32.xlu0 %v608_v46, %s1823_s24 }
 0x129   : > { %v2084_v47 = vpop.f32.mrb[2].mxu0  ;;  %v1588_v48 = vpop.f32.mrb[2].mxu1 }
 0x12a   : > { %765 = vrot.lane.b32.xlu1 %v1588_v48, %s1823_s24  ;;  %v2086_v49 = vpop.f32.mrb[3].mxu0  ;;  %v618_v50 = vpop.f32.mrb[3].mxu1 }
 0x12b   : > { %763 = vrot.lane.b32.xlu0 %v618_v50, %s1823_s24 }
 0x12d   : > { %v2088_v51 = vpop.f32.mrb[4].mxu0  ;;  %v1591_v52 = vpop.f32.mrb[4].mxu1 }
 0x12e   : > { %769 = vrot.lane.b32.xlu1 %v1591_v52, %s1823_s24  ;;  %v2090_v53 = vpop.f32.mrb[5].mxu0  ;;  %v628_v54 = vpop.f32.mrb[5].mxu1 }
 0x12f   : > { %767 = vrot.lane.b32.xlu0 %v628_v54, %s1823_s24 }
 0x131   : > { %v2092_v55 = vpop.f32.mrb[6].mxu0  ;;  %v1594_v56 = vpop.f32.mrb[6].mxu1 }
 0x132   : > { %773 = vrot.lane.b32.xlu1 %v1594_v56, %s1823_s24  ;;  %v2094_v57 = vpop.f32.mrb[7].mxu0  ;;  %v638_v58 = vpop.f32.mrb[7].mxu1 }
 0x133   : > { %771 = vrot.lane.b32.xlu0 %v638_v58, %s1823_s24 }
 0x135   : > { %v1561_v59 = vpop.f32.mrb[8].mxu0  ;;  %v1597_v60 = vpop.f32.mrb[8].mxu1 }
 0x136   : > { %793 = vrot.lane.b32.xlu1 %v1597_v60, %s1824_s14  ;;  %v528_v61 = vpop.f32.mrb[9].mxu0  ;;  %v648_v62 = vpop.f32.mrb[9].mxu1 }
 0x137   : > { %697 = vrot.lane.b32.xlu0 %v1561_v59, %s1825_s30 }
 0x139   : > { %v1564_v63 = vpop.f32.mrb[10].mxu0  ;;  %v1600_v0 = vpop.f32.mrb[10].mxu1 }
 0x13a   : > { %701 = vrot.lane.b32.xlu1 %v1564_v63, %s1825_s30  ;;  %v538_v1 = vpop.f32.mrb[11].mxu0  ;;  %v658_v2 = vpop.f32.mrb[11].mxu1 }
 0x13b   : > { %695 = vrot.lane.b32.xlu0 %v528_v61, %s1825_s30 }
 0x13d   : > { %v1567_v3 = vpop.f32.mrb[12].mxu0  ;;  %v1603_v4 = vpop.f32.mrb[12].mxu1 }
 0x13e   : > { %797 = vrot.lane.b32.xlu1 %v1600_v0, %s1824_s14  ;;  %v548_v5 = vpop.f32.mrb[13].mxu0  ;;  %v668_v6 = vpop.f32.mrb[13].mxu1 }
 0x13f   : > { %791 = vrot.lane.b32.xlu0 %v648_v62, %s1824_s14 }
 0x141   : > { %v1570_v7 = vpop.f32.mrb[14].mxu0  ;;  %v1606_v8 = vpop.f32.mrb[14].mxu1 }
 0x142   : > { %705 = vrot.lane.b32.xlu1 %v1567_v3, %s1825_s30  ;;  %v558_v9 = vpop.f32.mrb[15].mxu0  ;;  %v678_v10 = vpop.f32.mrb[15].mxu1 }
 0x143   : > { %699 = vrot.lane.b32.xlu0 %v538_v1, %s1825_s30 }
 0x145   : > { %v1573_v11 = vpop.f32.mrb[16].mxu0 }
 0x146   : > { %801 = vrot.lane.b32.xlu1 %v1603_v4, %s1824_s14  ;;  %v568_v12 = vpop.f32.mrb[17].mxu0 }
 0x147   : > { %795 = vrot.lane.b32.xlu0 %v658_v2, %s1824_s14 }
 0x149   : > { %v1576_v13 = vpop.f32.mrb[18].mxu0 }
 0x14a   : > { %709 = vrot.lane.b32.xlu1 %v1570_v7, %s1825_s30  ;;  %v578_v14 = vpop.f32.mrb[19].mxu0 }
 0x14b   : > { %703 = vrot.lane.b32.xlu0 %v548_v5, %s1825_s30 }
 0x14d   : > { %v1579_v15 = vpop.f32.mrb[20].mxu0 }
 0x14e   : > { %729 = vrot.lane.b32.xlu1 %v1573_v11, %s1826_s27  ;;  %v588_v16 = vpop.f32.mrb[21].mxu0 }
 0x14f   : > { %799 = vrot.lane.b32.xlu0 %v668_v6, %s1824_s14 }
 0x151   : > { %v1582_v17 = vpop.f32.mrb[22].mxu0 }
 0x152   : > { %727 = vrot.lane.b32.xlu1 %v568_v12, %s1826_s27  ;;  %v598_v19 = vpop.f32.mrb[23].mxu0 }
 0x153   : > { %707 = vrot.lane.b32.xlu0 %v558_v9, %s1825_s30 }
 0x156   : > { %733 = vrot.lane.b32.xlu1 %v1576_v13, %s1826_s27 }
 0x157   : > { %731 = vrot.lane.b32.xlu0 %v578_v14, %s1826_s27 }
 0x15a   : > { %737 = vrot.lane.b32.xlu1 %v1579_v15, %s1826_s27 }
 0x15b   : > { %735 = vrot.lane.b32.xlu0 %v588_v16, %s1826_s27 }
 0x15e   : > { %741 = vrot.lane.b32.xlu1 %v1582_v17, %s1826_s27 }
 0x15f   : > { %739 = vrot.lane.b32.xlu0 %v598_v19, %s1826_s27 }
 0x162   : > { %805 = vrot.lane.b32.xlu1 %v1606_v8, %s1824_s14 }
 0x163   : > { %803 = vrot.lane.b32.xlu0 %v678_v10, %s1824_s14 }
 0x198   : > { %v762_v21 = vpop.permute.xlu1 %761 }
 0x199   : > { %v760_v22 = vpop.permute.xlu0 %759 }
 0x19c   : > { %v766_v23 = vpop.permute.xlu1 %765 }
 0x19d   : > { %v764_v24 = vpop.permute.xlu0 %763 }
 0x1a0   : > { %v770_v25 = vpop.permute.xlu1 %769 }
 0x1a1   : > { %v768_v26 = vpop.permute.xlu0 %767 }
 0x1a4   : > { %v2123_v27 = vpop.permute.xlu1 %773 }
 0x1a5   : > { %v2125_v28 = vpop.permute.xlu0 %771 }
 0x1a8   : > { %v794_v29 = vpop.permute.xlu1 %793 }
 0x1a9   : > { %v698_v30 = vpop.permute.xlu0 %697 }
 0x1aa   : > { %v817_v41 = vsel %vm815_vm2, %v2080_v43, %v698_v30 }
 0x1ac   : > { %v702_v31 = vpop.permute.xlu1 %701 }
 0x1ad   : > { %v696_v32 = vpop.permute.xlu0 %695  ;;  %v819_v60 = vsel %vm815_vm2, %v2084_v47, %v702_v31 }
 0x1ae   : > { %v816_v52 = vsel %vm815_vm2, %v2082_v45, %v696_v32 }
 0x1b0   : > { %v798_v33 = vpop.permute.xlu1 %797 }
 0x1b1   : > { %v792_v34 = vpop.permute.xlu0 %791 }
 0x1b4   : > { %v706_v35 = vpop.permute.xlu1 %705 }
 0x1b5   : > { %v700_v36 = vpop.permute.xlu0 %699  ;;  %v821_v47 = vsel %vm815_vm2, %v2088_v51, %v706_v35 }
 0x1b6   : > { %v818_v62 = vsel %vm815_vm2, %v2086_v49, %v700_v36 }
 0x1b8   : > { %v802_v37 = vpop.permute.xlu1 %801 }
 0x1b9   : > { %v796_v38 = vpop.permute.xlu0 %795 }
 0x1bc   : > { %v710_v39 = vpop.permute.xlu1 %709 }
 0x1bd   : > { %v704_v40 = vpop.permute.xlu0 %703  ;;  %v823_v13 = vsel %vm815_vm2, %v2092_v55, %v710_v39  ;;  %v258_v55 = vld [vmem:[%s2299_s0] sm:$0x3f] }
 0x1be   : > { %v820_v49 = vsel %vm815_vm2, %v2090_v53, %v704_v40 }
 0x1c0   : > { %v730_v42 = vpop.permute.xlu1 %729 }
 0x1c1   : > { %v826_v44 = vsel %vm824_vm3, %v817_v41, %v730_v42  ;;  %v800_v46 = vpop.permute.xlu0 %799 }
 0x1c2   : > { %v835_v48 = vsel %vm833_vm4, %v826_v44, %v762_v21 }
 0x1c3   : > { %v844_v50 = vsel %vm842_vm5, %v835_v48, %v794_v29 }
 0x1c4   : > { %853 = vst.msk [vmem:[#allocation2 + $0x8] sm:$0xff] %vm851_vm6, %v844_v50  ;;  %v728_v54 = vpop.permute.xlu1 %727 }
 0x1c5   : > { %v825_v56 = vsel %vm824_vm3, %v816_v52, %v728_v54  ;;  %v708_v58 = vpop.permute.xlu0 %707 }
 0x1c6   : > { %v834_v43 = vsel %vm833_vm4, %v825_v56, %v760_v22  ;;  %v822_v16 = vsel %vm815_vm2, %v2094_v57, %v708_v58 }
 0x1c7   : > { %v843_v59 = vsel %vm842_vm5, %v834_v43, %v792_v34 }
 0x1c8   : > { %852 = vst.msk [vmem:[#allocation2] sm:$0xff] %vm851_vm6, %v843_v59  ;;  %v734_v61 = vpop.permute.xlu1 %733 }
 0x1c9   : > { %v828_v45 = vsel %vm824_vm3, %v819_v60, %v734_v61  ;;  %v732_v63 = vpop.permute.xlu0 %731 }
 0x1ca   : > { %v837_v0 = vsel %vm833_vm4, %v828_v45, %v766_v23  ;;  %v827_v1 = vsel %vm824_vm3, %v818_v62, %v732_v63 }
 0x1cb   : > { %v846_v2 = vsel %vm842_vm5, %v837_v0, %v798_v33  ;;  %v836_v3 = vsel %vm833_vm4, %v827_v1, %v764_v24  ;;  %v861_v12 = vld [vmem:[#allocation2 + $0x8] sm:$0xff] }
 0x1cc   : > { %855 = vst.msk [vmem:[#allocation2 + $0x18] sm:$0xff] %vm851_vm6, %v846_v2  ;;  %v845_v4 = vsel %vm842_vm5, %v836_v3, %v796_v38  ;;  %v738_v5 = vpop.permute.xlu1 %737 }
 0x1cd   : > { %854 = vst.msk [vmem:[#allocation2 + $0x10] sm:$0xff] %vm851_vm6, %v845_v4  ;;  %v830_v6 = vsel %vm824_vm3, %v821_v47, %v738_v5  ;;  %v736_v7 = vpop.permute.xlu0 %735 }
 0x1ce   : > { %v839_v8 = vsel %vm833_vm4, %v830_v6, %v770_v25  ;;  %v829_v9 = vsel %vm824_vm3, %v820_v49, %v736_v7 }
 0x1cf   : > { %v848_v10 = vsel %vm842_vm5, %v839_v8, %v802_v37  ;;  %v838_v51 = vsel %vm833_vm4, %v829_v9, %v768_v26  ;;  %v860_v11 = vld [vmem:[#allocation2] sm:$0xff] }
 0x1d0   : > { %857 = vst.msk [vmem:[#allocation2 + $0x28] sm:$0xff] %vm851_vm6, %v848_v10  ;;  %v847_v53 = vsel %vm842_vm5, %v838_v51, %v800_v46  ;;  %v742_v14 = vpop.permute.xlu1 %741  ;;  %v1640_v15 = vpack.c.bf16 %v861_v12, %v860_v11 }
 0x1d1   : > { %856 = vst.msk [vmem:[#allocation2 + $0x20] sm:$0xff] %vm851_vm6, %v847_v53  ;;  %v832_v17 = vsel %vm824_vm3, %v823_v13, %v742_v14  ;;  %v740_v19 = vpop.permute.xlu0 %739 }
 0x1d2   : > { %v831_v21 = vsel %vm824_vm3, %v822_v16, %v740_v19  ;;  %1641 = vmatpush3.bf16.msra.mxu1 %v1640_v15  ;;  %v841_v23 = vsel %vm833_vm4, %v832_v17, %v2123_v27 }
 0x1d3   : > { %1642 = vmatprep.subr.bf16.mxu1 %v1827_v18  ;;  %v981_v22 = vld [vmem:[#allocation2 + $0x18] sm:$0xff]  ;;  %v840_v26 = vsel %vm833_vm4, %v831_v21, %v2125_v28 }
 0x1d4   : > { %v806_v24 = vpop.permute.xlu1 %805  ;;  %v980_v57 = vld [vmem:[#allocation2 + $0x10] sm:$0xff] }
 0x1d5   : > { %v850_v25 = vsel %vm842_vm5, %v841_v23, %v806_v24  ;;  %v804_v29 = vpop.permute.xlu0 %803  ;;  %1612 = vmatmul.mubr.msk.f32.vlgmr.msra.gmra.mrb[16].mxu1 %vm301_vm0, %v258_v55  ;;  %v1643_v30 = vpack.c.bf16 %v981_v22, %v980_v57 }
 0x1d6   : > { %859 = vst.msk [vmem:[#allocation2 + $0x38] sm:$0xff] %vm851_vm6, %v850_v25  ;;  %v849_v31 = vsel %vm842_vm5, %v840_v26, %v804_v29  ;;  %1618 = vmatprep.mubr.msk.f32.mxu1 %vm1828_vm1, %v1829_v20 }
 0x1d7   : > { %858 = vst.msk [vmem:[#allocation2 + $0x30] sm:$0xff] %vm851_vm6, %v849_v31  ;;  %1644 = vmatpush3.bf16.msra.mxu1 %v1643_v30  ;;  %v1098_v27 = vld [vmem:[#allocation2 + $0x28] sm:$0xff] }
 0x1d8   : > { %1645 = vmatprep.subr.bf16.mxu1 %v1827_v18  ;;  %v1097_v32 = vld [vmem:[#allocation2 + $0x20] sm:$0xff] }
 0x1d9   : > { %v1646_v33 = vpack.c.bf16 %v1098_v27, %v1097_v32 }
 0x1da   : > { %1619 = vmatmul.mubr.msk.f32.vlgmr.msra.gmra.mrb[18].mxu1 %vm301_vm0, %v258_v55 }
 0x1db   : > { %1647 = vmatpush3.bf16.msra.mxu1 %v1646_v33  ;;  %1625 = vmatprep.mubr.msk.f32.mxu1 %vm1828_vm1, %v1829_v20 }
 0x1dc   : > { %1648 = vmatprep.subr.bf16.mxu1 %v1827_v18 }
 0x1dd   : > { %v1215_v28 = vld [vmem:[#allocation2 + $0x38] sm:$0xff] }
 0x1de   : > { %1626 = vmatmul.mubr.msk.f32.vlgmr.msra.gmra.mrb[20].mxu1 %vm301_vm0, %v258_v55  ;;  %v1214_v34 = vld [vmem:[#allocation2 + $0x30] sm:$0xff] }
 0x1df   : > { %v1649_v35 = vpack.c.bf16 %v1215_v28, %v1214_v34  ;;  %1632 = vmatprep.mubr.msk.f32.mxu1 %vm1828_vm1, %v1829_v20 }
 0x1e1   : > { %1650 = vmatpush3.bf16.msra.mxu1 %v1649_v35 }
 0x1e4   : > { %1633 = vmatmul.mubr.msk.f32.vlgmr.msra.gmra.mrb[22].mxu1 %vm301_vm0, %v258_v55 }
 0x2a8   : > { %v2193_v36 = vpop.f32.mrb[16].mxu1 }
 0x2a9   : > { %v2197_v37 = vmul.f32 %v2193_v36, %v2193_v36  ;;  %v1613_v38 = vpop.f32.mrb[17].mxu1 }
 0x2ab   : > { %961 = vrot.lane.b32.xlu0 %v2197_v37, %s1826_s27 }
 0x2ad   : > { %v2201_v18 = vpop.f32.mrb[18].mxu1 }
 0x2ae   : > { %v2205_v39 = vmul.f32 %v2201_v18, %v2201_v18  ;;  %v1620_v20 = vpop.f32.mrb[19].mxu1 }
 0x2b0   : > { %1078 = vrot.lane.b32.xlu1 %v2205_v39, %s1826_s27 }
 0x2b1   : > { %v2209_v40 = vpop.f32.mrb[20].mxu1 }
 0x2b2   : > { %v2213_v41 = vmul.f32 %v2209_v40, %v2209_v40  ;;  %v1627_v42 = vpop.f32.mrb[21].mxu1 }
 0x2b4   : > { %1195 = vrot.lane.b32.xlu0 %v2213_v41, %s1826_s27 }
 0x2b7   : > { %v2217_v44 = vpop.f32.mrb[22].mxu1 }
 0x2b8   : > { %937 = vrot.lane.b32.xlu0 %v2193_v36, %s1830_s21  ;;  %v2223_v46 = vmul.f32 %v2217_v44, %v2217_v44  ;;  %v1634_v48 = vpop.f32.mrb[23].mxu1 }
 0x2ba   : > { %1312 = vrot.lane.b32.xlu1 %v2223_v46, %s1826_s27 }
 0x2bc   : > { %1171 = vrot.lane.b32.xlu0 %v2209_v40, %s1830_s21 }
 0x2be   : > { %1054 = vrot.lane.b32.xlu1 %v2201_v18, %s1830_s21 }
 0x2c2   : > { %1288 = vrot.lane.b32.xlu1 %v2217_v44, %s1830_s21 }
 0x31d   : > { %v962_v50 = vpop.permute.xlu0 %961 }
 0x31e   : > { %v964_v52 = vsub.f32 %v2193_v36, %v962_v50 }
 0x320   : > { %966 = vrot.lane.b32.xlu0 %v964_v52, %s1830_s21 }
 0x322   : > { %v1079_v54 = vpop.permute.xlu1 %1078 }
 0x323   : > { %v1081_v56 = vsub.f32 %v2201_v18, %v1079_v54 }
 0x325   : > { %1083 = vrot.lane.b32.xlu1 %v1081_v56, %s1830_s21 }
 0x326   : > { %v1196_v58 = vpop.permute.xlu0 %1195 }
 0x327   : > { %v1198_v43 = vsub.f32 %v2209_v40, %v1196_v58 }
 0x329   : > { %1200 = vrot.lane.b32.xlu0 %v1198_v43, %s1830_s21 }
 0x32a   : > { %v938_v59 = vpop.permute.xlu0 %937 }
 0x32b   : > { %v2240_v60 = vmul.f32 %v938_v59, %v2193_v36 }
 0x32c   : > { %v1313_v61 = vpop.permute.xlu1 %1312 }
 0x32d   : > { %v1315_v62 = vsub.f32 %v2217_v44, %v1313_v61  ;;  %944 = vrot.lane.b32.xlu0 %v2240_v60, %s1824_s14 }
 0x32e   : > { %v1172_v45 = vpop.permute.xlu0 %1171 }
 0x32f   : > { %v2246_v63 = vmul.f32 %v1172_v45, %v2209_v40  ;;  %1317 = vrot.lane.b32.xlu1 %v1315_v62, %s1830_s21 }
 0x330   : > { %v1055_v0 = vpop.permute.xlu1 %1054 }
 0x331   : > { %v2250_v1 = vmul.f32 %v1055_v0, %v2201_v18  ;;  %1178 = vrot.lane.b32.xlu0 %v2246_v63, %s1824_s14 }
 0x333   : > { %1061 = vrot.lane.b32.xlu1 %v2250_v1, %s1824_s14 }
 0x334   : > { %v1289_v2 = vpop.permute.xlu1 %1288 }
 0x335   : > { %v2257_v3 = vmul.f32 %v1289_v2, %v2217_v44  ;;  %956 = vrot.lane.b32.xlu0 %v2197_v37, %s1830_s21 }
 0x337   : > { %1295 = vrot.lane.b32.xlu1 %v2257_v3, %s1824_s14  ;;  %v1292_v61 = vmul.f32 2.0, %v2257_v3 }
 0x339   : > { %1190 = vrot.lane.b32.xlu0 %v2213_v41, %s1830_s21 }
 0x33b   : > { %1073 = vrot.lane.b32.xlu1 %v2205_v39, %s1830_s21 }
 0x33f   : > { %1307 = vrot.lane.b32.xlu1 %v2223_v46, %s1830_s21 }
 0x392   : > { %v967_v47 = vpop.permute.xlu0 %966 }
 0x393   : > { %v969_v4 = vadd.f32 %v967_v47, %v964_v52 }
 0x395   : > { %v970_v5 = vadd.f32 0.0009, %v969_v4 }
 0x397   : > { %972 = vrot.lane.b32.xlu1 %v970_v5, %s1831_s26  ;;  %v1084_v49 = vpop.permute.xlu1 %1083 }
 0x398   : > { %v1086_v6 = vadd.f32 %v1084_v49, %v1081_v56  ;;  %v1058_v56 = vmul.f32 2.0, %v2250_v1 }
 0x39a   : > { %v1087_v7 = vadd.f32 0.0009, %v1086_v6  ;;  %v1059_v45 = vadd.f32 0.0001, %v1058_v56 }
 0x39b   : > { %v1201_v8 = vpop.permute.xlu0 %1200 }
 0x39c   : > { %v1203_v9 = vadd.f32 %v1201_v8, %v1198_v43  ;;  %1089 = vrot.lane.b32.xlu0 %v1087_v7, %s1831_s26 }
 0x39e   : > { %v1204_v10 = vadd.f32 0.0009, %v1203_v9 }
 0x39f   : > { %v945_v51 = vpop.permute.xlu0 %944 }
 0x3a0   : > { %v947_v11 = vsub.f32 %v2193_v36, %v945_v51  ;;  %1206 = vrot.lane.b32.xlu0 %v1204_v10, %s1831_s26 }
 0x3a1   : > { %v1318_v12 = vpop.permute.xlu1 %1317 }
 0x3a2   : > { %v948_v13 = vmul.f32 2.0, %v947_v11  ;;  %v1320_v53 = vadd.f32 %v1318_v12, %v1315_v62 }
 0x3a3   : > { %v1179_v14 = vpop.permute.xlu0 %1178 }
 0x3a4   : > { %v949_v15 = vadd.f32 0.0009, %v948_v13  ;;  %v1321_v16 = vadd.f32 0.0009, %v1320_v53  ;;  %v1181_v17 = vsub.f32 %v2209_v40, %v1179_v14 }
 0x3a5   : > { %v1062_v19 = vpop.permute.xlu1 %1061 }
 0x3a6   : > { %v1182_v21 = vmul.f32 2.0, %v1181_v17  ;;  %v1064_v55 = vsub.f32 %v2201_v18, %v1062_v19  ;;  %951 = vrot.lane.b32.xlu0 %v949_v15, %s1832_s22  ;;  %1323 = vrot.lane.b32.xlu1 %v1321_v16, %s1831_s26 }
 0x3a7   : > { %v957_v31 = vpop.permute.xlu0 %956 }
 0x3a8   : > { %v1183_v22 = vadd.f32 0.0009, %v1182_v21  ;;  %v1065_v23 = vmul.f32 2.0, %v1064_v55  ;;  %v959_v32 = vadd.f32 %v957_v31, %v2197_v37  ;;  %v941_v37 = vmul.f32 2.0, %v2240_v60 }
 0x3a9   : > { %v1296_v24 = vpop.permute.xlu1 %1295 }
 0x3aa   : > { %v1066_v57 = vadd.f32 0.0009, %v1065_v23  ;;  %v1298_v25 = vsub.f32 %v2217_v44, %v1296_v24  ;;  %1185 = vrot.lane.b32.xlu0 %v1183_v22, %s1832_s22  ;;  %v960_v36 = vadd.f32 0.0001, %v959_v32  ;;  %v942_v43 = vadd.f32 0.0001, %v941_v37 }
 0x3ab   : > { %v1191_v33 = vpop.permute.xlu0 %1190 }
 0x3ac   : > { %v1299_v26 = vmul.f32 2.0, %v1298_v25  ;;  %1068 = vrot.lane.b32.xlu1 %v1066_v57, %s1832_s22  ;;  %v1193_v34 = vadd.f32 %v1191_v33, %v2213_v41  ;;  %v1175_v41 = vmul.f32 2.0, %v2246_v63  ;;  %v1293_v63 = vadd.f32 0.0001, %v1292_v61 }
 0x3ad   : > { %v1074_v30 = vpop.permute.xlu1 %1073 }
 0x3ae   : > { %v1300_v29 = vadd.f32 0.0009, %v1299_v26  ;;  %v1076_v28 = vadd.f32 %v1074_v30, %v2205_v39  ;;  %v1194_v40 = vadd.f32 0.0001, %v1193_v34  ;;  %v1176_v62 = vadd.f32 0.0001, %v1175_v41 }
 0x3b0   : > { %1302 = vrot.lane.b32.xlu1 %v1300_v29, %s1832_s22  ;;  %v1077_v18 = vadd.f32 0.0001, %v1076_v28 }
 0x3b1   : > { %v1308_v27 = vpop.permute.xlu1 %1307 }
 0x3b2   : > { %v1310_v48 = vadd.f32 %v1308_v27, %v2223_v46 }
 0x3b4   : > { %v1311_v52 = vadd.f32 0.0001, %v1310_v48 }
 0x409   : > { %v973_v35 = vpop.permute.xlu1 %972 }
 0x40a   : > { %v975_v20 = vmul.f32 %v973_v35, %v960_v36 }
 0x40c   : > { %1711 = vrcp.f32 %v975_v20 }
 0x40e   : > { %v1090_v38 = vpop.permute.xlu0 %1089 }
 0x40f   : > { %v1092_v42 = vmul.f32 %v1090_v38, %v1077_v18 }
 0x411   : > { %1713 = vrcp.f32 %v1092_v42 }
 0x412   : > { %v1207_v44 = vpop.permute.xlu0 %1206 }
 0x413   : > { %v1209_v50 = vmul.f32 %v1207_v44, %v1194_v40 }
 0x415   : > { %1715 = vrcp.f32 %v1209_v50 }
 0x416   : > { %v1712_v0 = vpop.eup %1711 }
 0x418   : > { %v952_v39 = vpop.permute.xlu0 %951  ;;  %v1324_v54 = vpop.permute.xlu1 %1323 }
 0x419   : > { %v1326_v58 = vmul.f32 %v1324_v54, %v1311_v52  ;;  %v954_v46 = vmul.f32 %v952_v39, %v942_v43 }
 0x41b   : > { %1717 = vrcp.f32 %v1326_v58  ;;  %v1714_v47 = vpop.eup %1713  ;;  %v977_v49 = vmul.f32 %v1712_v0, %v954_v46 }
 0x41c   : > { %v1186_v59 = vpop.permute.xlu0 %1185 }
 0x41d   : > { %v1188_v60 = vmul.f32 %v1186_v59, %v1176_v62 }
 0x41e   : > { %v1069_v2 = vpop.permute.xlu1 %1068 }
 0x41f   : > { %v1071_v4 = vmul.f32 %v1069_v2, %v1059_v45  ;;  %v1716_v5 = vpop.eup %1715 }
 0x420   : > { %v1211_v1 = vmul.f32 %v1716_v5, %v1188_v60 }
 0x421   : > { %v1094_v6 = vmul.f32 %v1714_v47, %v1071_v4 }
 0x422   : > { %v1303_v7 = vpop.permute.xlu1 %1302 }
 0x423   : > { %v1095_v8 = vadd.f32 %v1094_v6, %v977_v49  ;;  %v1305_v9 = vmul.f32 %v1303_v7, %v1293_v63 }
 0x425   : > { %v1718_v10 = vpop.eup %1717  ;;  %v1212_v3 = vadd.f32 %v1211_v1, %v1095_v8 }
 0x426   : > { %v1328_v51 = vmul.f32 %v1718_v10, %v1305_v9 }
 0x428   : > { %v1329_v11 = vadd.f32 %v1328_v51, %v1212_v3 }
 0x42a   : > { %v1331_v12 = vsel %vm1330_vm7, %v1329_v11, 0.0 }
 0x42b   : > { %1332 = vadd.xlane.f32.xlu0 %v1331_v12 }
 0x4b8   : > { %v1333_v13 = vpop.xlane.xlu0 %1332 }
 0x4b9   : > { %v1334_v53 = vrot.slane %v1333_v13, 4 }
 0x4bb   : > { %v1335_v14 = vadd.f32 %v1334_v53, %v1333_v13 }
 0x4bd   : > { %v1336_v15 = vrot.slane %v1335_v14, 2 }
 0x4bf   : > { %v1337_v16 = vadd.f32 %v1336_v15, %v1335_v14 }
 0x4c1   : > { %v1338_v17 = vrot.slane %v1337_v16, 1 }
 0x4c3   : > { %v1339_v19 = vadd.f32 %v1338_v17, %v1337_v16 }
 0x4c5   : > { %1653 = vpush %v1339_v19 }
 0x4f6   : > { %s1654_s13 = spop %1653 }
 0x4f7   : > { %v1341_v21 = vstv %s1654_s13 }
 0x4f8   : > { %1342 = vst [vmem:[%s257_s10] sm:$0x1] %v1341_v21 }
 0x4f9 PF: > { %p17_p11 = scmp.ge.s32.totalorder %s1880_s20, 4   ;;  %s2310_s15 = smov %s1809_s16 }
 0x4fa   : > { %s2311_s16 = smov %s1813_s17  ;;  %s2312_s17 = smov %s1890_s23 }
 0x4fb   : > { %s2313_s18 = smov %s1880_s20  ;;  %19 = sbr.rel (!%p17_p11) target bundleno = 5 (0x5), region = 92 }
 0x502   :  { %1360 = vsyncpa [#allocation4], 1 }
 0x503   :  { %1362 = vsyncpa [#allocation4 + $0x1], 1 }
 0x504   :  { %1363 = vsyncpa [#allocation6], 1 }
 0x505   :  { %1365 = vsyncpa [#allocation6 + $0x1], 1 }

</bundles_post_ra>
